<compile_context>
chip_gen: v5e
topology: v5e:2x2
jax: 0.10.0
libtpu: 0.0.40
codegen_flags: <defaults>
</compile_context>

<pallas_src>
import functools

import jax
import jax.numpy as jnp
from jax import lax
from jax.experimental import pallas as pl
from jax.experimental.pallas import tpu as pltpu


def _cdiv(a, b):
    return (a + b - 1) // b


def _round_up(x, m):
    return _cdiv(x, m) * m


def _line_kernel(src_ref, dst_ref, pos_ref, neg_ref, *,
                 num_pos, num_total, epr, dsub, tiles_per_core):
    """One grid step: a lane-dense (rows, W) block holding rows*epr edges.

    grid = (n_split, tiles_per_core):
      axis 0 ("parallel")  -> TensorCore split on v7x, plain loop elsewhere
      axis 1 ("arbitrary") -> streaming / accumulation axis
    Each core accumulates into its own (1, 8, 128) output block.
    """
    c = pl.program_id(0)
    j = pl.program_id(1)

    @pl.when(j == 0)
    def _():
        pos_ref[...] = jnp.zeros_like(pos_ref)
        neg_ref[...] = jnp.zeros_like(neg_ref)

    s = src_ref[...].astype(jnp.float32)                  # (rows, W)   VPU
    d = dst_ref[...].astype(jnp.float32)
    prod = s * d
    rows, width = prod.shape

    if epr == 1:
        # One edge per block row: plain XLU row reduce.
        dots = jnp.sum(prod, axis=-1, keepdims=True)      # (rows, 1)
    else:
        # `epr` edges packed per 128-lane row: segmented reduce on the MXU
        # against a constant block-diagonal ones matrix.
        lane = lax.broadcasted_iota(jnp.int32, (width, epr), 0)
        grp = lax.broadcasted_iota(jnp.int32, (width, epr), 1)
        seg = (lane // dsub == grp).astype(jnp.float32)   # (W, epr)
        dots = jnp.dot(prod, seg, preferred_element_type=jnp.float32)  # (rows, epr)

    # Global edge index of every element of `dots`.
    tile_idx = c * tiles_per_core + j
    e0 = tile_idx * (rows * epr)
    r_io = lax.broadcasted_iota(jnp.int32, dots.shape, 0)
    g_io = lax.broadcasted_iota(jnp.int32, dots.shape, 1)
    eidx = e0 + r_io * epr + g_io
    is_pos = eidx < num_pos          # positive edges come first in the stream
    valid = eidx < num_total         # mask index-padding rows

    x = jnp.where(is_pos, dots, -dots)
    # numerically stable logsigmoid: log s(x) = min(x,0) - log1p(exp(-|x|))  (EUP)
    neg_ls = -(jnp.minimum(x, 0.0) - jnp.log1p(jnp.exp(-jnp.abs(x))))
    # Mask AFTER the nonlinearity so padded rows can never leak into the sum.
    # TODO(synk): if a bundle dump shows the EUP/VPU tail binding before HBM,
    # pack the dots into (ceil(edges/128), 128) before the transcendentals.
    neg_ls = jnp.where(valid, neg_ls, 0.0)

    total = jnp.sum(neg_ls)
    pos_part = jnp.sum(jnp.where(is_pos, neg_ls, 0.0))
    neg_part = total - pos_part

    # broadcast-add the scalar partials into the per-core resident blocks
    pos_ref[...] = pos_ref[...] + pos_part
    neg_ref[...] = neg_ref[...] + neg_part


def _line_sums(src_table, dst_table, src_idx, dst_idx, num_pos, *,
               tile_bytes=2 << 20):
    """One HBM streaming pass over the gathered edge embeddings.

    Returns (sum of -logsigmoid(dot)  over edges [0, num_pos),
             sum of -logsigmoid(-dot) over edges [num_pos, num_total)).
    """
    num_total = int(src_idx.shape[0])
    assert num_total > 0
    dim = int(src_table.shape[1])
    dtype = src_table.dtype
    itemsize = jnp.dtype(dtype).itemsize

    # Lane-dense packing for small embedding dims.
    if dim < 128 and 128 % dim == 0:
        epr = 128 // dim             # edges per packed 128-lane row
        width = 128
    else:
        epr = 1
        width = dim                  # equals full last dim -> legal block shape

    # Sublane granule: 8 rows for f32, 16 for bf16, 32 for 8-bit dtypes.
    granule = max(8, 32 // itemsize)

    rows_needed = _cdiv(num_total, epr)
    # Big per-step blocks (~tile_bytes per input) amortize the fixed grid-step
    # overhead; 2 inputs x 2 buffers x tile_bytes stays well inside scoped VMEM.
    target_rows = _round_up(max(granule, tile_bytes // (width * itemsize)), granule)
    rows_per_tile = min(target_rows, _round_up(rows_needed, granule))
    num_tiles = _cdiv(rows_needed, rows_per_tile)

    # Two-TensorCore split (helps v7x; a no-op loop on 1-TC chips).
    n_split = 2 if num_tiles >= 2 else 1
    tiles_per_core = _cdiv(num_tiles, n_split)
    total_tiles = n_split * tiles_per_core
    padded_edges = total_tiles * rows_per_tile * epr

    # Pad the tiny int32 index vectors (NOT the gathered activations).
    pad = padded_edges - num_total
    src_idx = jnp.pad(src_idx.astype(jnp.int32), (0, pad))
    dst_idx = jnp.pad(dst_idx.astype(jnp.int32), (0, pad))

    # Gather once in the wrapper -> contiguous (padded_edges, dim) streams.
    # TODO(synk): for dim*itemsize >= 512 B the gather could be moved in-kernel
    # (scalar-prefetched indices + double-buffered row DMAs) or fused via
    # CompilerParams(allow_input_fusion=...) to cut HBM traffic ~3x.
    src_emb = jnp.take(src_table, src_idx, axis=0)
    dst_emb = jnp.take(dst_table, dst_idx, axis=0)
    if epr > 1:
        src_emb = src_emb.reshape(padded_edges // epr, width)  # free row-major view
        dst_emb = dst_emb.reshape(padded_edges // epr, width)

    kernel = functools.partial(
        _line_kernel, num_pos=int(num_pos), num_total=num_total,
        epr=epr, dsub=dim, tiles_per_core=tiles_per_core)

    cost = pl.CostEstimate(
        flops=2 * num_total * dim + 10 * num_total,
        transcendentals=2 * num_total,
        bytes_accessed=2 * padded_edges * dim * itemsize + 2 * n_split * 8 * 128 * 4,
    )

    in_map = lambda c, j: (c * tiles_per_core + j, 0)
    acc_map = lambda c, j: (c, 0, 0)

    pos_out, neg_out = pl.pallas_call(
        kernel,
        out_shape=(jax.ShapeDtypeStruct((n_split, 8, 128), jnp.float32),
                   jax.ShapeDtypeStruct((n_split, 8, 128), jnp.float32)),
        grid=(n_split, tiles_per_core),
        in_specs=[pl.BlockSpec((rows_per_tile, width), in_map),
                  pl.BlockSpec((rows_per_tile, width), in_map)],
        out_specs=(pl.BlockSpec((1, 8, 128), acc_map),
                   pl.BlockSpec((1, 8, 128), acc_map)),
        compiler_params=pltpu.CompilerParams(
            dimension_semantics=("parallel", "arbitrary")),
        cost_estimate=cost,
    )(src_emb, dst_emb)

    return jnp.sum(pos_out[:, 0, 0]), jnp.sum(neg_out[:, 0, 0])


def line_forward(embedding, context_embedding, src_nodes, dst_nodes, *,
                 is_positive=True, order=2, tile_bytes=2 << 20):
    """Pallas implementation of LINE.forward -> scalar f32 loss."""
    batch = int(src_nodes.shape[0])
    if batch == 0:
        return jnp.float32(0.0)
    dst_table = context_embedding if order == 2 else embedding
    num_pos = batch if is_positive else 0
    pos_sum, neg_sum = _line_sums(embedding, dst_table, src_nodes, dst_nodes,
                                  num_pos, tile_bytes=tile_bytes)
    return (pos_sum + neg_sum) / jnp.float32(batch)


def line_pos_neg_loss(embedding, context_embedding, pos_src, pos_dst,
                      neg_src, neg_dst, *, order=2, tile_bytes=2 << 20):
    """Fused positive + negative pass (the LINE training step): one HBM stream
    over the concatenated edge list, returns (pos_loss, neg_loss)."""
    npos = int(pos_src.shape[0])
    nneg = int(neg_src.shape[0])
    dst_table = context_embedding if order == 2 else embedding
    if npos == 0 and nneg == 0:
        return jnp.float32(0.0), jnp.float32(0.0)
    src = jnp.concatenate([pos_src.astype(jnp.int32), neg_src.astype(jnp.int32)])
    dst = jnp.concatenate([pos_dst.astype(jnp.int32), neg_dst.astype(jnp.int32)])
    pos_sum, neg_sum = _line_sums(embedding, dst_table, src, dst, npos,
                                  tile_bytes=tile_bytes)
    pos_loss = pos_sum / jnp.float32(max(npos, 1))
    neg_loss = neg_sum / jnp.float32(max(nneg, 1))
    return pos_loss, neg_loss


def _xavier_uniform(key, shape, dtype=jnp.float32):
    fan_in, fan_out = shape[1], shape[0]  # matches nn.init.xavier_uniform_ on (N, D)
    limit = (6.0 / (fan_in + fan_out)) ** 0.5
    return jax.random.uniform(key, shape, dtype=dtype, minval=-limit, maxval=limit)


def _reference_forward(embedding, context_embedding, src, dst, is_positive, order):
    src_e = embedding[src].astype(jnp.float32)
    dst_e = (context_embedding if order == 2 else embedding)[dst].astype(jnp.float32)
    dot = jnp.sum(src_e * dst_e, axis=1)
    x = dot if is_positive else -dot
    return -jnp.mean(jax.nn.log_sigmoid(x))


if __name__ == "__main__":
    key = jax.random.PRNGKey(0)
    (k_emb, k_ctx, k_emb2, k_ctx2, k_s1, k_d1,
     k_s2, k_d2, k_nd) = jax.random.split(key, 9)

    # Case 1: module defaults (embedding_dim=128, order=2) -> already lane-dense.
    num_nodes, dim = 64, 128
    embedding = _xavier_uniform(k_emb, (num_nodes, dim))
    context = _xavier_uniform(k_ctx, (num_nodes, dim))
    batch = 8
    src = jax.random.randint(k_s1, (batch,), 0, num_nodes, dtype=jnp.int32)
    dst = jax.random.randint(k_d1, (batch,), 0, num_nodes, dtype=jnp.int32)

    pos = line_forward(embedding, context, src, dst, is_positive=True, order=2)
    neg = line_forward(embedding, context, src, dst, is_positive=False, order=2)
    jax.block_until_ready((pos, neg))
    assert jnp.allclose(pos, _reference_forward(embedding, context, src, dst, True, 2),
                        atol=1e-4, rtol=1e-4)
    assert jnp.allclose(neg, _reference_forward(embedding, context, src, dst, False, 2),
                        atol=1e-4, rtol=1e-4)

    # Case 2: small embedding dim (lane-packed epr=4 + MXU reduce) + ragged batch.
    num_nodes2, dim2 = 48, 32
    emb2 = _xavier_uniform(k_emb2, (num_nodes2, dim2))
    ctx2 = _xavier_uniform(k_ctx2, (num_nodes2, dim2))
    batch2 = 13
    src2 = jax.random.randint(k_s2, (batch2,), 0, num_nodes2, dtype=jnp.int32)
    dst2 = jax.random.randint(k_d2, (batch2,), 0, num_nodes2, dtype=jnp.int32)
    pos2 = line_forward(emb2, ctx2, src2, dst2, is_positive=True, order=2)
    neg2 = line_forward(emb2, ctx2, src2, dst2, is_positive=False, order=2)
    jax.block_until_ready((pos2, neg2))
    assert jnp.allclose(pos2, _reference_forward(emb2, ctx2, src2, dst2, True, 2),
                        atol=1e-4, rtol=1e-4)
    assert jnp.allclose(neg2, _reference_forward(emb2, ctx2, src2, dst2, False, 2),
                        atol=1e-4, rtol=1e-4)

    # Case 3: fused pos+neg training losses (negative_ratio=5) with a tiny tile
    # to exercise multi-tile accumulation and the 2-way core-split grid.
    nneg = batch * 5
    nsrc = jnp.repeat(src, 5)
    ndst = jax.random.randint(k_nd, (nneg,), 0, num_nodes, dtype=jnp.int32)
    pos_l, neg_l = line_pos_neg_loss(embedding, context, src, dst, nsrc, ndst,
                                     order=2, tile_bytes=4096)
    jax.block_until_ready((pos_l, neg_l))
    assert jnp.allclose(pos_l, _reference_forward(embedding, context, src, dst, True, 2),
                        atol=1e-4, rtol=1e-4)
    assert jnp.allclose(neg_l, _reference_forward(embedding, context, nsrc, ndst, False, 2),
                        atol=1e-4, rtol=1e-4)

    print("KERNEL_OK")
</pallas_src>

<mosaic_0001>
module attributes {stable_mosaic.version = 11 : i64} {
  func.func @_line_kernel(%arg0: i32, %arg1: i32, %arg2: memref<8x128xf32, #tpu.memory_space<vmem>>, %arg3: memref<8x128xf32, #tpu.memory_space<vmem>>, %arg4: memref<1x8x128xf32, #tpu.memory_space<vmem>>, %arg5: memref<1x8x128xf32, #tpu.memory_space<vmem>>) attributes {dimension_semantics = [#tpu.dimension_semantics<parallel>, #tpu.dimension_semantics<arbitrary>], iteration_bounds = array<i64: 1, 1>, scalar_prefetch = 0 : i64, scratch_operands = 0 : i64, tpu.core_type = #tpu.core_type<tc>, window_params = [{transform_indices = @transform_0, window_bounds = array<i64: 8, 128>}, {transform_indices = @transform_1, window_bounds = array<i64: 8, 128>}, {transform_indices = @transform_2, window_bounds = array<i64: 1, 8, 128>}, {transform_indices = @transform_3, window_bounds = array<i64: 1, 8, 128>}]} {
    %c0_i32 = arith.constant 0 : i32
    %0 = arith.cmpi eq, %arg1, %c0_i32 : i32
    %1 = arith.extui %0 : i1 to i32
    %c0_i32_0 = arith.constant 0 : i32
    %2 = arith.cmpi ne, %1, %c0_i32_0 : i32
    scf.if %2 {
      %cst_27 = arith.constant 0.000000e+00 : f32
      %56 = vector.broadcast %cst_27 : f32 to vector<1x8x128xf32>
      %c0_28 = arith.constant 0 : index
      %c0_29 = arith.constant 0 : index
      %c0_30 = arith.constant 0 : index
      %57 = vector.load %arg4[%c0_28, %c0_29, %c0_30] : memref<1x8x128xf32, #tpu.memory_space<vmem>>, vector<1x8x128xf32>
      tpu.vector_store %arg4[%c0_28, %c0_29, %c0_30], %56 {strides = array<i32>} : memref<1x8x128xf32, #tpu.memory_space<vmem>>, vector<1x8x128xf32>,
      %cst_31 = arith.constant 0.000000e+00 : f32
      %58 = vector.broadcast %cst_31 : f32 to vector<1x8x128xf32>
      %c0_32 = arith.constant 0 : index
      %c0_33 = arith.constant 0 : index
      %c0_34 = arith.constant 0 : index
      %59 = vector.load %arg5[%c0_32, %c0_33, %c0_34] : memref<1x8x128xf32, #tpu.memory_space<vmem>>, vector<1x8x128xf32>
      tpu.vector_store %arg5[%c0_32, %c0_33, %c0_34], %58 {strides = array<i32>} : memref<1x8x128xf32, #tpu.memory_space<vmem>>, vector<1x8x128xf32>,
    } else {
    }
    %c0 = arith.constant 0 : index
    %c0_1 = arith.constant 0 : index
    %3 = vector.load %arg2[%c0, %c0_1] : memref<8x128xf32, #tpu.memory_space<vmem>>, vector<8x128xf32>
    %c0_2 = arith.constant 0 : index
    %c0_3 = arith.constant 0 : index
    %4 = vector.load %arg3[%c0_2, %c0_3] : memref<8x128xf32, #tpu.memory_space<vmem>>, vector<8x128xf32>
    %5 = arith.mulf %3, %4 : vector<8x128xf32>
    %cst = arith.constant dense<0.000000e+00> : vector<8xf32>
    %6 = vector.multi_reduction <add>, %5, %cst [1] : vector<8x128xf32> to vector<8xf32>
    %7 = vector.shape_cast %6 : vector<8xf32> to vector<8x1xf32>
    %c1_i32 = arith.constant 1 : i32
    %8 = arith.muli %arg0, %c1_i32 : i32
    %9 = arith.addi %8, %arg1 : i32
    %c8_i32 = arith.constant 8 : i32
    %10 = arith.muli %9, %c8_i32 : i32
    %11 = tpu.iota {dimensions = array<i32: 0>} : vector<8x1xi32>
    %12 = tpu.iota {dimensions = array<i32: 1>} : vector<8x1xi32>
    %c1_i32_4 = arith.constant 1 : i32
    %13 = vector.broadcast %c1_i32_4 : i32 to vector<8x1xi32>
    %14 = arith.muli %11, %13 : vector<8x1xi32>
    %15 = vector.broadcast %10 : i32 to vector<8x1xi32>
    %16 = arith.addi %15, %14 : vector<8x1xi32>
    %17 = arith.addi %16, %12 : vector<8x1xi32>
    %c8_i32_5 = arith.constant 8 : i32
    %18 = vector.broadcast %c8_i32_5 : i32 to vector<8x1xi32>
    %19 = arith.cmpi slt, %17, %18 : vector<8x1xi32>
    %c8_i32_6 = arith.constant 8 : i32
    %20 = vector.broadcast %c8_i32_6 : i32 to vector<8x1xi32>
    %21 = arith.cmpi slt, %17, %20 : vector<8x1xi32>
    %cst_7 = arith.constant 0.000000e+00 : f32
    %22 = vector.broadcast %cst_7 : f32 to vector<8x1xf32>
    %23 = arith.subf %22, %7 : vector<8x1xf32>
    %24 = arith.select %19, %7, %23 : vector<8x1xi1>, vector<8x1xf32>
    %cst_8 = arith.constant 0.000000e+00 : f32
    %25 = vector.broadcast %cst_8 : f32 to vector<8x1xf32>
    %26 = arith.minimumf %24, %25 : vector<8x1xf32>
    %27 = math.absf %24 : vector<8x1xf32>
    %cst_9 = arith.constant 0.000000e+00 : f32
    %28 = vector.broadcast %cst_9 : f32 to vector<8x1xf32>
    %29 = arith.subf %28, %27 : vector<8x1xf32>
    %30 = math.exp %29 : vector<8x1xf32>
    %31 = math.log1p %30 : vector<8x1xf32>
    %32 = arith.subf %26, %31 : vector<8x1xf32>
    %cst_10 = arith.constant 0.000000e+00 : f32
    %33 = vector.broadcast %cst_10 : f32 to vector<8x1xf32>
    %34 = arith.subf %33, %32 : vector<8x1xf32>
    %cst_11 = arith.constant 0.000000e+00 : f32
    %35 = vector.broadcast %cst_11 : f32 to vector<8x1xf32>
    %36 = arith.select %21, %34, %35 : vector<8x1xi1>, vector<8x1xf32>
    %37 = vector.shape_cast %36 : vector<8x1xf32> to vector<1x8x1xf32>
    %cst_12 = arith.constant dense<0.000000e+00> : vector<1xf32>
    %38 = vector.multi_reduction <add>, %37, %cst_12 [1, 2] : vector<1x8x1xf32> to vector<1xf32>
    %39 = vector.shape_cast %38 : vector<1xf32> to vector<1x1x1xf32>
    %40 = vector.extract %39[0, 0, 0] : f32 from vector<1x1x1xf32>
    %cst_13 = arith.constant 0.000000e+00 : f32
    %41 = vector.broadcast %cst_13 : f32 to vector<8x1xf32>
    %42 = arith.select %19, %36, %41 : vector<8x1xi1>, vector<8x1xf32>
    %43 = vector.shape_cast %42 : vector<8x1xf32> to vector<1x8x1xf32>
    %cst_14 = arith.constant dense<0.000000e+00> : vector<1xf32>
    %44 = vector.multi_reduction <add>, %43, %cst_14 [1, 2] : vector<1x8x1xf32> to vector<1xf32>
    %45 = vector.shape_cast %44 : vector<1xf32> to vector<1x1x1xf32>
    %46 = vector.extract %45[0, 0, 0] : f32 from vector<1x1x1xf32>
    %47 = arith.subf %40, %46 : f32
    %c0_15 = arith.constant 0 : index
    %c0_16 = arith.constant 0 : index
    %c0_17 = arith.constant 0 : index
    %48 = vector.load %arg4[%c0_15, %c0_16, %c0_17] : memref<1x8x128xf32, #tpu.memory_space<vmem>>, vector<1x8x128xf32>
    %49 = vector.broadcast %46 : f32 to vector<1x8x128xf32>
    %50 = arith.addf %48, %49 : vector<1x8x128xf32>
    %c0_18 = arith.constant 0 : index
    %c0_19 = arith.constant 0 : index
    %c0_20 = arith.constant 0 : index
    %51 = vector.load %arg4[%c0_18, %c0_19, %c0_20] : memref<1x8x128xf32, #tpu.memory_space<vmem>>, vector<1x8x128xf32>
    tpu.vector_store %arg4[%c0_18, %c0_19, %c0_20], %50 {strides = array<i32>} : memref<1x8x128xf32, #tpu.memory_space<vmem>>, vector<1x8x128xf32>,
    %c0_21 = arith.constant 0 : index
    %c0_22 = arith.constant 0 : index
    %c0_23 = arith.constant 0 : index
    %52 = vector.load %arg5[%c0_21, %c0_22, %c0_23] : memref<1x8x128xf32, #tpu.memory_space<vmem>>, vector<1x8x128xf32>
    %53 = vector.broadcast %47 : f32 to vector<1x8x128xf32>
    %54 = arith.addf %52, %53 : vector<1x8x128xf32>
    %c0_24 = arith.constant 0 : index
    %c0_25 = arith.constant 0 : index
    %c0_26 = arith.constant 0 : index
    %55 = vector.load %arg5[%c0_24, %c0_25, %c0_26] : memref<1x8x128xf32, #tpu.memory_space<vmem>>, vector<1x8x128xf32>
    tpu.vector_store %arg5[%c0_24, %c0_25, %c0_26], %54 {strides = array<i32>} : memref<1x8x128xf32, #tpu.memory_space<vmem>>, vector<1x8x128xf32>,
    return
  }
  func.func @transform_0(%arg0: i32, %arg1: i32) -> (i32, i32) {
    %c1_i32 = arith.constant 1 : i32
    %0 = arith.muli %arg0, %c1_i32 : i32
    %1 = arith.addi %0, %arg1 : i32
    %c0_i32 = arith.constant 0 : i32
    %c0_i32_0 = arith.constant 0 : i32
    return %1, %c0_i32 : i32, i32
  }
  func.func @transform_1(%arg0: i32, %arg1: i32) -> (i32, i32) {
    %c1_i32 = arith.constant 1 : i32
    %0 = arith.muli %arg0, %c1_i32 : i32
    %1 = arith.addi %0, %arg1 : i32
    %c0_i32 = arith.constant 0 : i32
    %c0_i32_0 = arith.constant 0 : i32
    return %1, %c0_i32 : i32, i32
  }
  func.func @transform_2(%arg0: i32, %arg1: i32) -> (i32, i32, i32) {
    %c0_i32 = arith.constant 0 : i32
    %c0_i32_0 = arith.constant 0 : i32
    %c0_i32_1 = arith.constant 0 : i32
    return %arg0, %c0_i32, %c0_i32_0 : i32, i32, i32
  }
  func.func @transform_3(%arg0: i32, %arg1: i32) -> (i32, i32, i32) {
    %c0_i32 = arith.constant 0 : i32
    %c0_i32_0 = arith.constant 0 : i32
    %c0_i32_1 = arith.constant 0 : i32
    return %arg0, %c0_i32, %c0_i32_0 : i32, i32, i32
  }
}

</mosaic_0001>

<bundles_post_ra>
// kernel: tpu_custom_call.1
= control target key start
LH: loop header
LB: loop body
LE: loop exit
PB: predicated region body
PF: predicated region fallthrough
CT: control target
= control target key end

     0   :  { %9 = vsyncpa [#allocation3], 0  ;;  %s298_s0 = inlined_call_operand.hbm [shape: f32[8,128], index: 0, kind: input, shape index: {}]   ;;  %s299_s1 = inlined_call_operand.hbm [shape: f32[8,128], index: 1, kind: input, shape index: {}]   ;;  %s300_s2 = inlined_call_operand.hbm [shape: f32[1,8,128], index: 2, kind: output, shape index: {0}]   ;;  %s301_s3 = inlined_call_operand.hbm [shape: f32[1,8,128], index: 3, kind: output, shape index: {1}]  }
   0x1   :  { %10 = vsyncpa [#allocation6], 0 }
   0x2   :  { %11 = vsyncpa [#allocation4], 0 }
   0x3   :  { %12 = vsyncpa [#allocation9], 0  ;;  %s21_s14 = sshll.u32 %s298_s0, 4  ;;  %s260_s15 = smov [#allocation2]   ;;  %s22_s14 = int_to_ptr.hbm [resolvable:$true] %s21_s14 }
   0x4   :  { %s23_s16 = sshll.u32 %s260_s15, 4  ;;  %s35_s19 = sshll.u32 %s299_s1, 4  ;;  %s24_s16 = int_to_ptr.vmem [resolvable:$true] %s23_s16  ;;  %s36_s19 = int_to_ptr.hbm [resolvable:$true] %s35_s19 }
   0x5   :  { %26 = dma.hbm_to_vmem [thread:$0]  %s22_s14, 128, %s24_s16, [#allocation3]  }
   0x6   :  { %s261_s20 = smov [#allocation5]  }
   0x7   :  { %s37_s21 = sshll.u32 %s261_s20, 4  ;;  %s38_s21 = int_to_ptr.vmem [resolvable:$true] %s37_s21 }
   0x8   :  { %40 = dma.hbm_to_vmem [thread:$0]  %s36_s19, 128, %s38_s21, [#allocation6]  }
   0x9   :  { %252 = dma.done.wait [#allocation3], 128  }
   0xa   :  { %253 = vsyncadd [#allocation3], 4294967168 }
   0xb   :  { %254 = dma.done.wait [#allocation6], 128  }
   0xc   :  { %255 = vsyncadd [#allocation6], 4294967168  ;;  %v57_v0 = vld [vmem:[#allocation2] sm:$0xff]  ;;  %v58_v1 = vld [vmem:[#allocation5] sm:$0xff]  ;;  %v64_v3 = vlaneseq  ;;  %vm91_vm2 = vcmask 7168   ;;  %s262_s0 = smov [#allocation7]  }
   0xd   :  { %v59_v2 = vmul.f32 %v58_v1, %v57_v0  ;;  %s116_s1 = sshll.u32 %s262_s0, 4  ;;  %s118_s24 = sshll.u32 %s300_s2, 4  ;;  %s117_s1 = int_to_ptr.vmem [resolvable:$true] %s116_s1  ;;  %s119_s24 = int_to_ptr.hbm [resolvable:$true] %s118_s24 }
   0xe   :  { %v65_v4 = vshrl.u32 %v64_v3, 7  ;;  %v67_v5 = vand.u32 127, %v64_v3  ;;  %s263_s26 = smov [#allocation8]   ;;  %s129_s4 = sshll.u32 %s301_s3, 4  ;;  %s130_s4 = int_to_ptr.hbm [resolvable:$true] %s129_s4 }
   0xf   :  { %60 = vadd.xlane.f32.xlu0 %v59_v2  ;;  %s127_s27 = sshll.u32 %s263_s26, 4  ;;  %s128_s27 = int_to_ptr.vmem [resolvable:$true] %s127_s27 }
  0x10   :  { %v70_v6 = vadd.s32 %v67_v5, %v65_v4 }
  0x12   :  { %vm71_vm0 = vcmp.lt.s32.totalorder %v70_v6, 8 }
  0x82   :  { %v61_v7 = vpop.xlane.xlu0 %60 }
  0x83   :  { %v72_v8 = vsub.f32 0.0, %v61_v7 }
  0x85   :  { %v73_v9 = vsel %vm71_vm0, %v61_v7, %v72_v8 }
  0x86   :  { %v75_v10 = vand.u32 2147483647, %v73_v9  ;;  %v74_v21 = vmin.f32 %v73_v9, 0.0 }
  0x88   :  { %v76_v11 = vsub.f32 0.0, %v75_v10 }
  0x8a   :  { %v77_v12 = vmul.f32 1.442695, %v76_v11 }
  0x8c   :  { %152 = vpow2.f32 %v77_v12 }
  0x92   :  { %v153_v13 = vpop.eup %152 }
  0x93   :  { %v79_v14 = vadd.f32 1.0, %v153_v13  ;;  %v82_v15 = vmul.f32 -0.5, %v153_v13  ;;  %v85_v17 = vand.u32 2147483647, %v153_v13 }
  0x95   :  { %154 = vlog2.f32 %v79_v14  ;;  %v83_v16 = vadd.f32 1.0, %v82_v15  ;;  %vm86_vm1 = vcmp.lt.f32.partialorder %v85_v17, 0.0004427343 }
  0x97   :  { %v84_v20 = vmul.f32 %v153_v13, %v83_v16 }
  0x9b   :  { %v155_v18 = vpop.eup %154 }
  0x9c   :  { %v81_v19 = vmul.f32 0.6931472, %v155_v18 }
  0x9e   :  { %v87_v22 = vsel %vm86_vm1, %v84_v20, %v81_v19 }
  0x9f   :  { %v88_v23 = vsub.f32 %v74_v21, %v87_v22 }
  0xa1   :  { %v89_v24 = vsub.f32 0.0, %v88_v23 }
  0xa3   :  { %v90_v25 = vsel %vm71_vm0, %v89_v24, 0.0 }
  0xa4   :  { %v92_v26 = vsel %vm91_vm2, %v90_v25, 0.0 }
  0xa5   :  { %93 = vadd.xlane.f32.xlu0 %v92_v26 }
 0x118   :  { %v94_v27 = vpop.xlane.xlu0 %93 }
 0x119   :  { %v95_v28 = vrot.slane %v94_v27, 4 }
 0x11b   :  { %v96_v29 = vadd.f32 %v95_v28, %v94_v27 }
 0x11d   :  { %v97_v30 = vrot.slane %v96_v29, 2 }
 0x11f   :  { %v98_v31 = vadd.f32 %v97_v30, %v96_v29 }
 0x121   :  { %v99_v32 = vrot.slane %v98_v31, 1 }
 0x123   :  { %v100_v33 = vadd.f32 %v99_v32, %v98_v31 }
 0x125   :  { %145 = vpush %v100_v33 }
 0x156   :  { %s146_s25 = spop %145 }
 0x157   :  { %s102_s28 = ssub.f32 %s146_s25, %s146_s25  ;;  %v104_v34 = vstv %s146_s25 }
 0x158   :  { %106 = vst [vmem:[#allocation7] sm:$0xff] %v104_v34 }
 0x159   :  { %v108_v35 = vstv %s102_s28  ;;  %121 = dma.vmem_to_hbm [thread:$0]  %s117_s1, 128, %s119_s24, [#allocation4]  }
 0x15a   :  { %110 = vst [vmem:[#allocation8] sm:$0xff] %v108_v35 }
 0x15b   :  { %132 = dma.vmem_to_hbm [thread:$0]  %s128_s27, 128, %s130_s4, [#allocation9]  }
 0x15c   :  { %256 = dma.done.wait [#allocation4], 128  }
 0x15d   :  { %257 = vsyncadd [#allocation4], 4294967168 }
 0x15e   :  { %258 = dma.done.wait [#allocation9], 128  }
 0x15f   :  { %259 = vsyncadd [#allocation9], 4294967168 }
 0x160   :  { %141 = vsyncpa [#allocation3], 1 }
 0x161   :  { %142 = vsyncpa [#allocation6], 1 }
 0x162   :  { %143 = vsyncpa [#allocation4], 1 }
 0x163   :  { %144 = vsyncpa [#allocation9], 1 }

</bundles_post_ra>
